<compile_context>
chip_gen: v6e
topology: v6e:2x2x1
jax: 0.10.0
libtpu: 0.0.40
codegen_flags: <defaults>
</compile_context>

<pallas_src>
import jax
import jax.numpy as jnp
from jax.experimental import pallas as pl
from jax.experimental.pallas import tpu as pltpu

_NEG_SLOPE = 0.01  # nn.LeakyReLU() default negative_slope


def _overall_mlp_kernel(x_ref, w_ref, b_ref, out_ref):
    """One batch tile.

    x_ref  : (TB, A) f32 activations (VMEM)
    w_ref  : (1, A)  f32 regressor weight, lane-dense, grid-resident (VMEM)
    b_ref  : (1,)    f32 regressor bias (SMEM scalar)
    out_ref: (TB, 1) f32
    """
    x = x_ref[...]                                   # (TB, A)
    w = w_ref[...]                                   # (1, A), broadcasts over rows
    w_neg = w * jnp.float32(_NEG_SLOPE)              # one vreg, once per grid step
    # LeakyReLU fused with the weight multiply (VPU), then XLU lane reduction.
    hw = jnp.where(x >= 0, x * w, x * w_neg)         # (TB, A)
    out_ref[...] = jnp.sum(hw, axis=-1, keepdims=True) + b_ref[0]


def _round_up(n, m):
    return ((n + m - 1) // m) * m


def _choose_tile(B, A):
    """Pick the batch tile from a VMEM byte budget (kernel is HBM-DMA-bound)."""
    if B <= 8:
        return B                                     # single full-array block
    a_pad = _round_up(A, 128)                        # VMEM lane padding
    budget_bytes = 4 << 20                           # ~4 MiB per activation buffer
    tb = max(8, (budget_bytes // (a_pad * 4)) // 8 * 8)
    # Keep >= 2 grid steps when possible so megacore ("parallel") can shard batch.
    tb = min(tb, _round_up(pl.cdiv(B, 2), 8))
    tb = min(tb, _round_up(B, 8))
    return tb


def overall_mlp_forward(aspect_score, weight, bias):
    """aspect_score: (B, A) f32, weight: (1, A) f32, bias: (1,) f32 -> (B, 1)."""
    B, A = aspect_score.shape
    TB = _choose_tile(B, A)
    grid = (pl.cdiv(B, TB),)

    # Explicit scoped-VMEM limit sized from the tiles (input + output double-
    # buffered, lane-padded) with headroom; safe for v5e (16 MiB default scoped)
    # and under v7x's 64 MiB physical VMEM.
    a_pad = _round_up(A, 128)
    vmem_need = 2 * TB * a_pad * 4 + 2 * TB * 128 * 4 + 2 * a_pad * 4
    vmem_limit = int(min(max(2 * vmem_need, 16 << 20), 48 << 20))

    cost = pl.CostEstimate(
        flops=3 * B * A,                 # fused leaky-relu*w select + add-reduce
        transcendentals=0,
        bytes_accessed=4 * (B * A + A + 1 + B),
    )

    return pl.pallas_call(
        _overall_mlp_kernel,
        out_shape=jax.ShapeDtypeStruct((B, 1), jnp.float32),
        grid=grid,
        in_specs=[
            pl.BlockSpec((TB, A), lambda i: (i, 0)),             # activations tile
            pl.BlockSpec((1, A), lambda i: (0, 0)),              # weight, resident
            pl.BlockSpec(memory_space=pltpu.MemorySpace.SMEM),   # bias scalar
        ],
        out_specs=pl.BlockSpec((TB, 1), lambda i: (i, 0)),
        compiler_params=pltpu.CompilerParams(
            dimension_semantics=("parallel",),
            vmem_limit_bytes=vmem_limit,
        ),
        cost_estimate=cost,
    )(aspect_score, weight, bias)


def init_params(key, aspect_num):
    """Mirror torch nn.Linear(aspect_num, 1) default init: U(-k, k), k=1/sqrt(in)."""
    k = float(aspect_num) ** -0.5
    kw, kb = jax.random.split(key)
    weight = jax.random.uniform(kw, (1, aspect_num), jnp.float32, -k, k)
    bias = jax.random.uniform(kb, (1,), jnp.float32, -k, k)
    return weight, bias


def _reference(aspect_score, weight, bias):
    h = jnp.where(aspect_score >= 0, aspect_score,
                  jnp.float32(_NEG_SLOPE) * aspect_score)
    return h @ weight.T + bias           # (B, 1)


if __name__ == "__main__":
    aspect_num = 20

    key = jax.random.PRNGKey(0)
    kp, kx1, kx2 = jax.random.split(key, 3)
    weight, bias = init_params(kp, aspect_num)

    # Small, non-aligned batch: single full-array block (no pad, grid=1).
    x_small = jax.random.normal(kx1, (6, aspect_num), jnp.float32)
    out_small = jax.block_until_ready(overall_mlp_forward(x_small, weight, bias))
    ref_small = _reference(x_small, weight, bias)
    assert out_small.shape == (6, 1), out_small.shape
    assert jnp.allclose(out_small, ref_small, atol=1e-5, rtol=1e-5)

    # Larger batch with a ragged boundary block: exercises the cdiv grid and
    # Pallas boundary masking (no wrapper-side pad or output slice).
    x_big = jax.random.normal(kx2, (300, aspect_num), jnp.float32)
    out_big = jax.block_until_ready(overall_mlp_forward(x_big, weight, bias))
    ref_big = _reference(x_big, weight, bias)
    assert out_big.shape == (300, 1), out_big.shape
    assert jnp.allclose(out_big, ref_big, atol=1e-5, rtol=1e-5)

    print("KERNEL_OK")
</pallas_src>

<mosaic_0001>
module attributes {stable_mosaic.version = 11 : i64} {
  func.func @_overall_mlp_kernel(%arg0: i32, %arg1: memref<6x20xf32, #tpu.memory_space<vmem>>, %arg2: memref<1x20xf32, #tpu.memory_space<vmem>>, %arg3: memref<1xf32, #tpu.memory_space<smem>>, %arg4: memref<6x1xf32, #tpu.memory_space<vmem>>) attributes {dimension_semantics = [#tpu.dimension_semantics<parallel>], iteration_bounds = array<i64: 1>, scalar_prefetch = 0 : i64, scratch_operands = 0 : i64, tpu.core_type = #tpu.core_type<tc>, window_params = [{transform_indices = @transform_0, window_bounds = array<i64: 6, 20>}, {pipeline_mode = #tpu.pipeline_mode<synchronous>, transform_indices = @transform_1, window_bounds = array<i64: 1, 20>}, {transform_indices = @transform_2, window_bounds = array<i64: 1>}, {transform_indices = @transform_3, window_bounds = array<i64: 6, 1>}]} {
    %c0 = arith.constant 0 : index
    %c0_0 = arith.constant 0 : index
    %0 = vector.load %arg1[%c0, %c0_0] : memref<6x20xf32, #tpu.memory_space<vmem>>, vector<6x20xf32>
    %c0_1 = arith.constant 0 : index
    %c0_2 = arith.constant 0 : index
    %1 = vector.load %arg2[%c0_1, %c0_2] : memref<1x20xf32, #tpu.memory_space<vmem>>, vector<1x20xf32>
    %cst = arith.constant 0.00999999977 : f32
    %2 = vector.broadcast %cst : f32 to vector<1x20xf32>
    %3 = arith.mulf %1, %2 : vector<1x20xf32>
    %cst_3 = arith.constant 0.000000e+00 : f32
    %4 = vector.broadcast %cst_3 : f32 to vector<6x20xf32>
    %5 = arith.cmpf oge, %0, %4 : vector<6x20xf32>
    %6 = vector.broadcast %1 : vector<1x20xf32> to vector<6x20xf32>
    %7 = arith.mulf %0, %6 : vector<6x20xf32>
    %8 = vector.broadcast %3 : vector<1x20xf32> to vector<6x20xf32>
    %9 = arith.mulf %0, %8 : vector<6x20xf32>
    %10 = arith.select %5, %7, %9 : vector<6x20xi1>, vector<6x20xf32>
    %cst_4 = arith.constant dense<0.000000e+00> : vector<6xf32>
    %11 = vector.multi_reduction <add>, %10, %cst_4 [1] : vector<6x20xf32> to vector<6xf32>
    %12 = vector.shape_cast %11 : vector<6xf32> to vector<6x1xf32>
    %c0_5 = arith.constant 0 : index
    %13 = memref.load %arg3[%c0_5] : memref<1xf32, #tpu.memory_space<smem>>
    %14 = vector.broadcast %13 : f32 to vector<6x1xf32>
    %15 = arith.addf %12, %14 : vector<6x1xf32>
    %c0_6 = arith.constant 0 : index
    %c0_7 = arith.constant 0 : index
    %16 = vector.load %arg4[%c0_6, %c0_7] : memref<6x1xf32, #tpu.memory_space<vmem>>, vector<6x1xf32>
    tpu.vector_store %arg4[%c0_6, %c0_7], %15 {strides = array<i32>} : memref<6x1xf32, #tpu.memory_space<vmem>>, vector<6x1xf32>,
    return
  }
  func.func @transform_0(%arg0: i32) -> (i32, i32) {
    %c0_i32 = arith.constant 0 : i32
    %c0_i32_0 = arith.constant 0 : i32
    return %arg0, %c0_i32 : i32, i32
  }
  func.func @transform_1(%arg0: i32) -> (i32, i32) {
    %c0_i32 = arith.constant 0 : i32
    %c0_i32_0 = arith.constant 0 : i32
    %c0_i32_1 = arith.constant 0 : i32
    return %c0_i32, %c0_i32_0 : i32, i32
  }
  func.func @transform_2(%arg0: i32) -> i32 {
    %c0_i32 = arith.constant 0 : i32
    %c0_i32_0 = arith.constant 0 : i32
    return %c0_i32 : i32
  }
  func.func @transform_3(%arg0: i32) -> (i32, i32) {
    %c0_i32 = arith.constant 0 : i32
    %c0_i32_0 = arith.constant 0 : i32
    return %arg0, %c0_i32 : i32, i32
  }
}

</mosaic_0001>

<bundles_post_ra>
// kernel: tpu_custom_call.1
= control target key start
LH: loop header
LB: loop body
LE: loop exit
PB: predicated region body
PF: predicated region fallthrough
CT: control target
= control target key end

     0   :  { %9 = vsyncpa [#allocation4], 0  ;;  %s83_s12 = smov [#allocation3]   ;;  %s116_s0 = inlined_call_operand.hbm [shape: f32[6,20], index: 0, kind: input, shape index: {}]   ;;  %s117_s1 = inlined_call_operand.vmem [shape: f32[1,20], index: 1, kind: input, shape index: {}]   ;;  %s118_s2 = inlined_call_operand.<no memory space> [shape: f32[1], index: 2, kind: input, shape index: {}]   ;;  %s119_s3 = inlined_call_operand.vmem [shape: f32[6,1], index: 3, kind: output, shape index: {}]  }
   0x1   :  { %s16_s13 = sshll.u32 %s83_s12, 4  ;;  %s17_s13 = int_to_ptr.vmem [resolvable:$true] %s16_s13 }
   0x2   :  { %s69_s14 = scalar_lea.vmem %s17_s13, 128  ;;  %p74_p1 = scmp.lt.s32.totalorder %s17_s13, %s17_s13 }
   0x3   :  { %p70_p0 = scmp.ne.s32.totalorder %s17_s13, %s69_s14  ;;  %p75_p2 = scmp.lt.s32.totalorder %s69_s14, %s69_s14 }
   0x5   :  { %p76_p3 = por %p75_p2, %p74_p1 }
   0x7   :  { %p77_p4 = pnand %p76_p3, %p70_p0 }
   0x9   :  { %80 = shalt.err (!%p77_p4)
}
   0xa   :  { %19 = dma.hbm_to_vmem [thread:$0]  %s116_s0, 128, %s17_s13, [#allocation4]  }
   0xb   :  { %81 = dma.done.wait [#allocation4], 128  }
   0xc   :  { %82 = vsyncadd [#allocation4], 4294967168  ;;  %v32_v0 = vlaneseq  ;;  %v27_v3 = vld [vmem:[#allocation3] sm:$0x3f]  ;;  %vm46_vm1 = vcmask 160768   ;;  %v51_v12 = vstv %s118_s2  ;;  %vm53_vm2 = vcmask 5120  }
   0xd   :  { %v28_v4 = vld [vmem:[%s117_s1] sm:$0x1]  ;;  %vm30_vm0 = vcmp.ge.f32.partialorder %v27_v3, 0.0 }
   0xe   :  { %v33_v1 = vshrl.u32 %v32_v0, 7  ;;  %v29_v5 = vmul.f32 0.01, %v28_v4 }
  0x10   :  { %v34_v2 = vsub.s32 0, %v33_v1 }
  0x12   :  { %v35_v6 = vrot.slane %v28_v4, %v34_v2  ;;  %v42_v8 = vrot.slane %v29_v5, %v34_v2 }
  0x14   :  { %v37_v7 = vmul.f32 %v35_v6, %v27_v3  ;;  %v44_v9 = vmul.f32 %v42_v8, %v27_v3 }
  0x16   :  { %v45_v10 = vsel %vm30_vm0, %v37_v7, %v44_v9 }
  0x17   :  { %v47_v11 = vsel %vm46_vm1, %v45_v10, 0.0 }
  0x18   :  { %48 = vadd.xlane.f32.xlu0 %v47_v11 }
  0xa1   :  { %v49_v13 = vpop.xlane.xlu0 %48 }
  0xa2   :  { %v52_v14 = vadd.f32 %v51_v12, %v49_v13 }
  0xa4   :  { %54 = vst.msk [vmem:[%s119_s3] sm:$0x3f] %vm53_vm2, %v52_v14 }
  0xa5   :  { %59 = vsyncpa [#allocation4], 1 }

</bundles_post_ra>
